<compile_context>
chip_gen: v6e
topology: v6e:2x2x1
jax: 0.10.0
libtpu: 0.0.40
codegen_flags: <defaults>
</compile_context>

<pallas_src>
import jax
import jax.numpy as jnp
from jax import lax
from jax.experimental import pallas as pl
from jax.experimental.pallas import tpu as pltpu

LANE = 128
_CHUNK = 32  # sublanes processed per inner-loop step (multiple of 8)


def _outconv_kernel(w_ref, b_ref, x_ref, o_ref):
    # w_ref : SMEM (c_out * c_in,) f32   (flattened row-major [o, c])
    # b_ref : SMEM (c_out,)        f32
    # x_ref : VMEM (1, c_in,  S, 128)
    # o_ref : VMEM (1, c_out, S, 128)
    c_in = x_ref.shape[1]
    c_out = o_ref.shape[1]
    s_rows = x_ref.shape[2]

    def compute_chunk(start, size):
        # Load each input channel's (size, 128) slab once; reuse across outputs.
        xs = [x_ref[0, c, pl.ds(start, size), :].astype(jnp.float32)
              for c in range(c_in)]
        for o in range(c_out):
            acc = xs[0] * w_ref[o * c_in] + b_ref[o]   # bias fused into c == 0
            for c in range(1, c_in):
                acc = acc + xs[c] * w_ref[o * c_in + c]
            # Direct per-channel store: no concatenate, bounded live ranges.
            o_ref[0, o, pl.ds(start, size), :] = acc.astype(o_ref.dtype)

    n_full = s_rows // _CHUNK
    rem = s_rows - n_full * _CHUNK

    if n_full > 0:
        def body(i, carry):
            compute_chunk(pl.multiple_of(i * _CHUNK, _CHUNK), _CHUNK)
            return carry
        lax.fori_loop(0, n_full, body, 0,
                      unroll=True if n_full <= 16 else 8)
    if rem > 0:
        compute_chunk(n_full * _CHUNK, rem)


def _plan_spatial_tiling(rows, c_in, c_out, dtype_bytes,
                         target_step_bytes=4 * 1024 * 1024,
                         vmem_budget_bytes=16 * 1024 * 1024):
    """Pick sublane rows per tile and (possibly padded) total rows.

    Returns (s_rows, rows_padded). Targets multi-MiB HBM traffic per grid step
    while keeping the double-buffered VMEM footprint under `vmem_budget_bytes`
    (safe for v7x's smaller VMEM as well as v5e/v6e).
    """
    per_row = (c_in + c_out) * LANE * dtype_bytes      # HBM bytes per sublane row
    cap = min(target_step_bytes // per_row, vmem_budget_bytes // (2 * per_row))
    cap = max(8, int(cap))
    if rows <= cap:
        return rows, rows                  # single full-extent spatial tile
    # Prefer a multiple-of-8 divisor of `rows` (no padding) if it keeps steps big.
    best = 0
    for s in range(8, cap + 1, 8):
        if rows % s == 0:
            best = s
    if best >= max(8, cap // 4):
        return best, rows
    # Otherwise pad rows up to a multiple of a near-cap tile size.
    s = (cap // 8) * 8
    rows_pad = ((rows + s - 1) // s) * s
    return s, rows_pad


def outconv_1x1(x_nchw, weight, bias):
    """OutConv.forward: 1x1 Conv2d (stride 1, no padding).

    x_nchw : (N, C_in, H, W)
    weight : (C_out, C_in, 1, 1)   (PyTorch Conv2d weight layout)
    bias   : (C_out,)
    returns: (N, C_out, H, W)
    """
    n, c_in, h, w = x_nchw.shape
    c_out = weight.shape[0]
    hw = h * w
    dtype_bytes = jnp.dtype(x_nchw.dtype).itemsize

    # Lane-align the flattened spatial axis, then tile it on sublanes.
    rows = -(-hw // LANE)                                   # ceil(hw / 128)
    s_rows, rows_pad = _plan_spatial_tiling(rows, c_in, c_out, dtype_bytes)
    hw_pad = rows_pad * LANE

    x_flat = x_nchw.reshape(n, c_in, hw)                    # free reshape
    if hw_pad != hw:
        x_flat = jnp.pad(x_flat, ((0, 0), (0, 0), (0, hw_pad - hw)))
    x4 = x_flat.reshape(n, c_in, rows_pad, LANE)            # sublane-dense layout

    w_flat = weight.reshape(c_out * c_in).astype(jnp.float32)   # 1-D SMEM table
    b_vec = bias.astype(jnp.float32)

    in_block = c_in * s_rows * LANE * dtype_bytes
    out_block = c_out * s_rows * LANE * dtype_bytes
    vmem_limit = int(min(max(2.5 * (in_block + out_block), 32 * 1024 * 1024),
                         48 * 1024 * 1024))

    grid = (n, rows_pad // s_rows)

    out4 = pl.pallas_call(
        _outconv_kernel,
        out_shape=jax.ShapeDtypeStruct((n, c_out, rows_pad, LANE), x_nchw.dtype),
        grid_spec=pltpu.PrefetchScalarGridSpec(
            num_scalar_prefetch=0,
            grid=grid,
            in_specs=[
                pl.BlockSpec(memory_space=pltpu.MemorySpace.SMEM),   # weights
                pl.BlockSpec(memory_space=pltpu.MemorySpace.SMEM),   # bias
                pl.BlockSpec((1, c_in, s_rows, LANE),
                             lambda i, j: (i, 0, j, 0)),             # x tile
            ],
            out_specs=pl.BlockSpec((1, c_out, s_rows, LANE),
                                   lambda i, j: (i, 0, j, 0)),
        ),
        compiler_params=pltpu.CompilerParams(
            dimension_semantics=("parallel", "parallel"),
            vmem_limit_bytes=vmem_limit),
    )(w_flat, b_vec, x4)

    out_flat = out4.reshape(n, c_out, hw_pad)
    if hw_pad != hw:
        out_flat = out_flat[:, :, :hw]
    return out_flat.reshape(n, c_out, h, w)
    # TODO(synk): for very large non-factorable row counts a ragged remainder
    # tile (instead of host-side padding) would avoid the padded HBM copy.


def _reference(x, weight, bias):
    c_out, c_in = weight.shape[0], weight.shape[1]
    return (jnp.einsum("nchw,oc->nohw", x, weight.reshape(c_out, c_in))
            + bias.reshape(1, c_out, 1, 1))


if __name__ == "__main__":
    # Small shapes consistent with OutConv(in_channels=4, out_channels=3).
    N, C_IN, C_OUT = 2, 4, 3

    key = jax.random.PRNGKey(0)
    kx, kw, kb, kx2, kx3 = jax.random.split(key, 5)

    bound = 1.0 / (C_IN ** 0.5)
    weight = jax.random.uniform(kw, (C_OUT, C_IN, 1, 1),
                                minval=-bound, maxval=bound, dtype=jnp.float32)
    bias = jax.random.uniform(kb, (C_OUT,),
                              minval=-bound, maxval=bound, dtype=jnp.float32)

    # Case 1: 128-aligned spatial (main path).
    x1 = jax.random.normal(kx, (N, C_IN, 16, 16), dtype=jnp.float32)
    out1 = outconv_1x1(x1, weight, bias)
    jax.block_until_ready(out1)
    assert out1.shape == (N, C_OUT, 16, 16)
    assert jnp.allclose(out1, _reference(x1, weight, bias), atol=1e-5, rtol=1e-5)

    # Case 2: non-128-aligned spatial (padded path).
    x2 = jax.random.normal(kx2, (N, C_IN, 10, 10), dtype=jnp.float32)
    out2 = outconv_1x1(x2, weight, bias)
    jax.block_until_ready(out2)
    assert out2.shape == (N, C_OUT, 10, 10)
    assert jnp.allclose(out2, _reference(x2, weight, bias), atol=1e-5, rtol=1e-5)

    # Case 3: larger spatial exercising the inner chunked loop.
    x3 = jax.random.normal(kx3, (N, C_IN, 64, 64), dtype=jnp.float32)
    out3 = outconv_1x1(x3, weight, bias)
    jax.block_until_ready(out3)
    assert out3.shape == (N, C_OUT, 64, 64)
    assert jnp.allclose(out3, _reference(x3, weight, bias), atol=1e-5, rtol=1e-5)

    print("KERNEL_OK")
</pallas_src>

<mosaic_0001>
module attributes {stable_mosaic.version = 11 : i64} {
  func.func @_outconv_kernel(%arg0: i32, %arg1: i32, %arg2: memref<12xf32, #tpu.memory_space<smem>>, %arg3: memref<3xf32, #tpu.memory_space<smem>>, %arg4: memref<1x4x2x128xf32, #tpu.memory_space<vmem>>, %arg5: memref<1x3x2x128xf32, #tpu.memory_space<vmem>>) attributes {dimension_semantics = [#tpu.dimension_semantics<parallel>, #tpu.dimension_semantics<parallel>], iteration_bounds = array<i64: 2, 1>, scalar_prefetch = 0 : i64, scratch_operands = 0 : i64, tpu.core_type = #tpu.core_type<tc>, window_params = [{transform_indices = @transform_0, window_bounds = array<i64: 12>}, {transform_indices = @transform_1, window_bounds = array<i64: 3>}, {transform_indices = @transform_2, window_bounds = array<i64: 1, 4, 2, 128>}, {transform_indices = @transform_3, window_bounds = array<i64: 1, 3, 2, 128>}]} {
    %c0 = arith.constant 0 : index
    %c0_0 = arith.constant 0 : index
    %c0_1 = arith.constant 0 : index
    %c0_2 = arith.constant 0 : index
    %0 = vector.load %arg4[%c0, %c0_0, %c0_1, %c0_2] : memref<1x4x2x128xf32, #tpu.memory_space<vmem>>, vector<1x1x2x128xf32>
    %1 = vector.shape_cast %0 : vector<1x1x2x128xf32> to vector<2x128xf32>
    %c0_3 = arith.constant 0 : index
    %c1 = arith.constant 1 : index
    %c0_4 = arith.constant 0 : index
    %c0_5 = arith.constant 0 : index
    %2 = vector.load %arg4[%c0_3, %c1, %c0_4, %c0_5] : memref<1x4x2x128xf32, #tpu.memory_space<vmem>>, vector<1x1x2x128xf32>
    %3 = vector.shape_cast %2 : vector<1x1x2x128xf32> to vector<2x128xf32>
    %c0_6 = arith.constant 0 : index
    %c2 = arith.constant 2 : index
    %c0_7 = arith.constant 0 : index
    %c0_8 = arith.constant 0 : index
    %4 = vector.load %arg4[%c0_6, %c2, %c0_7, %c0_8] : memref<1x4x2x128xf32, #tpu.memory_space<vmem>>, vector<1x1x2x128xf32>
    %5 = vector.shape_cast %4 : vector<1x1x2x128xf32> to vector<2x128xf32>
    %c0_9 = arith.constant 0 : index
    %c3 = arith.constant 3 : index
    %c0_10 = arith.constant 0 : index
    %c0_11 = arith.constant 0 : index
    %6 = vector.load %arg4[%c0_9, %c3, %c0_10, %c0_11] : memref<1x4x2x128xf32, #tpu.memory_space<vmem>>, vector<1x1x2x128xf32>
    %7 = vector.shape_cast %6 : vector<1x1x2x128xf32> to vector<2x128xf32>
    %c0_12 = arith.constant 0 : index
    %8 = memref.load %arg2[%c0_12] : memref<12xf32, #tpu.memory_space<smem>>
    %9 = vector.broadcast %8 : f32 to vector<2x128xf32>
    %10 = arith.mulf %1, %9 : vector<2x128xf32>
    %c0_13 = arith.constant 0 : index
    %11 = memref.load %arg3[%c0_13] : memref<3xf32, #tpu.memory_space<smem>>
    %12 = vector.broadcast %11 : f32 to vector<2x128xf32>
    %13 = arith.addf %10, %12 : vector<2x128xf32>
    %c1_14 = arith.constant 1 : index
    %14 = memref.load %arg2[%c1_14] : memref<12xf32, #tpu.memory_space<smem>>
    %15 = vector.broadcast %14 : f32 to vector<2x128xf32>
    %16 = arith.mulf %3, %15 : vector<2x128xf32>
    %17 = arith.addf %13, %16 : vector<2x128xf32>
    %c2_15 = arith.constant 2 : index
    %18 = memref.load %arg2[%c2_15] : memref<12xf32, #tpu.memory_space<smem>>
    %19 = vector.broadcast %18 : f32 to vector<2x128xf32>
    %20 = arith.mulf %5, %19 : vector<2x128xf32>
    %21 = arith.addf %17, %20 : vector<2x128xf32>
    %c3_16 = arith.constant 3 : index
    %22 = memref.load %arg2[%c3_16] : memref<12xf32, #tpu.memory_space<smem>>
    %23 = vector.broadcast %22 : f32 to vector<2x128xf32>
    %24 = arith.mulf %7, %23 : vector<2x128xf32>
    %25 = arith.addf %21, %24 : vector<2x128xf32>
    %c0_17 = arith.constant 0 : index
    %c0_18 = arith.constant 0 : index
    %c0_19 = arith.constant 0 : index
    %c0_20 = arith.constant 0 : index
    %26 = vector.load %arg5[%c0_17, %c0_18, %c0_19, %c0_20] : memref<1x3x2x128xf32, #tpu.memory_space<vmem>>, vector<1x1x2x128xf32>
    %27 = vector.shape_cast %26 : vector<1x1x2x128xf32> to vector<2x128xf32>
    %28 = vector.shape_cast %25 : vector<2x128xf32> to vector<1x1x2x128xf32>
    tpu.vector_store %arg5[%c0_17, %c0_18, %c0_19, %c0_20], %28 {strides = array<i32>} : memref<1x3x2x128xf32, #tpu.memory_space<vmem>>, vector<1x1x2x128xf32>,
    %c4 = arith.constant 4 : index
    %29 = memref.load %arg2[%c4] : memref<12xf32, #tpu.memory_space<smem>>
    %30 = vector.broadcast %29 : f32 to vector<2x128xf32>
    %31 = arith.mulf %1, %30 : vector<2x128xf32>
    %c1_21 = arith.constant 1 : index
    %32 = memref.load %arg3[%c1_21] : memref<3xf32, #tpu.memory_space<smem>>
    %33 = vector.broadcast %32 : f32 to vector<2x128xf32>
    %34 = arith.addf %31, %33 : vector<2x128xf32>
    %c5 = arith.constant 5 : index
    %35 = memref.load %arg2[%c5] : memref<12xf32, #tpu.memory_space<smem>>
    %36 = vector.broadcast %35 : f32 to vector<2x128xf32>
    %37 = arith.mulf %3, %36 : vector<2x128xf32>
    %38 = arith.addf %34, %37 : vector<2x128xf32>
    %c6 = arith.constant 6 : index
    %39 = memref.load %arg2[%c6] : memref<12xf32, #tpu.memory_space<smem>>
    %40 = vector.broadcast %39 : f32 to vector<2x128xf32>
    %41 = arith.mulf %5, %40 : vector<2x128xf32>
    %42 = arith.addf %38, %41 : vector<2x128xf32>
    %c7 = arith.constant 7 : index
    %43 = memref.load %arg2[%c7] : memref<12xf32, #tpu.memory_space<smem>>
    %44 = vector.broadcast %43 : f32 to vector<2x128xf32>
    %45 = arith.mulf %7, %44 : vector<2x128xf32>
    %46 = arith.addf %42, %45 : vector<2x128xf32>
    %c0_22 = arith.constant 0 : index
    %c1_23 = arith.constant 1 : index
    %c0_24 = arith.constant 0 : index
    %c0_25 = arith.constant 0 : index
    %47 = vector.load %arg5[%c0_22, %c1_23, %c0_24, %c0_25] : memref<1x3x2x128xf32, #tpu.memory_space<vmem>>, vector<1x1x2x128xf32>
    %48 = vector.shape_cast %47 : vector<1x1x2x128xf32> to vector<2x128xf32>
    %49 = vector.shape_cast %46 : vector<2x128xf32> to vector<1x1x2x128xf32>
    tpu.vector_store %arg5[%c0_22, %c1_23, %c0_24, %c0_25], %49 {strides = array<i32>} : memref<1x3x2x128xf32, #tpu.memory_space<vmem>>, vector<1x1x2x128xf32>,
    %c8 = arith.constant 8 : index
    %50 = memref.load %arg2[%c8] : memref<12xf32, #tpu.memory_space<smem>>
    %51 = vector.broadcast %50 : f32 to vector<2x128xf32>
    %52 = arith.mulf %1, %51 : vector<2x128xf32>
    %c2_26 = arith.constant 2 : index
    %53 = memref.load %arg3[%c2_26] : memref<3xf32, #tpu.memory_space<smem>>
    %54 = vector.broadcast %53 : f32 to vector<2x128xf32>
    %55 = arith.addf %52, %54 : vector<2x128xf32>
    %c9 = arith.constant 9 : index
    %56 = memref.load %arg2[%c9] : memref<12xf32, #tpu.memory_space<smem>>
    %57 = vector.broadcast %56 : f32 to vector<2x128xf32>
    %58 = arith.mulf %3, %57 : vector<2x128xf32>
    %59 = arith.addf %55, %58 : vector<2x128xf32>
    %c10 = arith.constant 10 : index
    %60 = memref.load %arg2[%c10] : memref<12xf32, #tpu.memory_space<smem>>
    %61 = vector.broadcast %60 : f32 to vector<2x128xf32>
    %62 = arith.mulf %5, %61 : vector<2x128xf32>
    %63 = arith.addf %59, %62 : vector<2x128xf32>
    %c11 = arith.constant 11 : index
    %64 = memref.load %arg2[%c11] : memref<12xf32, #tpu.memory_space<smem>>
    %65 = vector.broadcast %64 : f32 to vector<2x128xf32>
    %66 = arith.mulf %7, %65 : vector<2x128xf32>
    %67 = arith.addf %63, %66 : vector<2x128xf32>
    %c0_27 = arith.constant 0 : index
    %c2_28 = arith.constant 2 : index
    %c0_29 = arith.constant 0 : index
    %c0_30 = arith.constant 0 : index
    %68 = vector.load %arg5[%c0_27, %c2_28, %c0_29, %c0_30] : memref<1x3x2x128xf32, #tpu.memory_space<vmem>>, vector<1x1x2x128xf32>
    %69 = vector.shape_cast %68 : vector<1x1x2x128xf32> to vector<2x128xf32>
    %70 = vector.shape_cast %67 : vector<2x128xf32> to vector<1x1x2x128xf32>
    tpu.vector_store %arg5[%c0_27, %c2_28, %c0_29, %c0_30], %70 {strides = array<i32>} : memref<1x3x2x128xf32, #tpu.memory_space<vmem>>, vector<1x1x2x128xf32>,
    return
  }
  func.func @transform_0(%arg0: i32, %arg1: i32) -> i32 {
    %c0_i32 = arith.constant 0 : i32
    %c0_i32_0 = arith.constant 0 : i32
    return %c0_i32 : i32
  }
  func.func @transform_1(%arg0: i32, %arg1: i32) -> i32 {
    %c0_i32 = arith.constant 0 : i32
    %c0_i32_0 = arith.constant 0 : i32
    return %c0_i32 : i32
  }
  func.func @transform_2(%arg0: i32, %arg1: i32) -> (i32, i32, i32, i32) {
    %c0_i32 = arith.constant 0 : i32
    %c0_i32_0 = arith.constant 0 : i32
    %c0_i32_1 = arith.constant 0 : i32
    return %arg0, %c0_i32, %arg1, %c0_i32_0 : i32, i32, i32, i32
  }
  func.func @transform_3(%arg0: i32, %arg1: i32) -> (i32, i32, i32, i32) {
    %c0_i32 = arith.constant 0 : i32
    %c0_i32_0 = arith.constant 0 : i32
    %c0_i32_1 = arith.constant 0 : i32
    return %arg0, %c0_i32, %arg1, %c0_i32_0 : i32, i32, i32, i32
  }
}

</mosaic_0001>

<bundles_post_ra>
// kernel: tpu_custom_call.1
= control target key start
LH: loop header
LB: loop body
LE: loop exit
PB: predicated region body
PF: predicated region fallthrough
CT: control target
= control target key end

     0   :  { %s898_s0 = inlined_call_operand.hbm [shape: f32[12], index: 0, kind: input, shape index: {}]   ;;  %s899_s1 = inlined_call_operand.vmem [shape: f32[3], index: 1, kind: input, shape index: {}]   ;;  %s900_s2 = inlined_call_operand.hbm [shape: f32[2,4,2,128], index: 2, kind: input, shape index: {}]   ;;  %s901_s3 = inlined_call_operand.hbm [shape: f32[2,3,2,128], index: 3, kind: output, shape index: {}]  }
   0x1   :  { %903 = sst [smem:[#allocation14_spill]] %s898_s0 }
   0x2   :  { %8 = vsyncpa [#allocation5], 0 }
   0x3   :  { %9 = vsyncpa [#allocation6], 0 }
   0x4   :  { %10 = vsyncpa [#allocation3], 0 }
   0x5   :  { %12 = vsyncpa [#allocation3 + $0x1], 0 }
   0x6   :  { %13 = vsyncpa [#allocation4], 0 }
   0x7   :  { %15 = vsyncpa [#allocation4 + $0x1], 0  ;;  %s717_s12 = smov 0   ;;  %s719_s13 = smov 0  }
   0x8   :  { %s721_s14 = smov 0   ;;  %s723_s15 = smov 0  }
   0x9   :  { %s725_s16 = smov 0   ;;  %s727_s17 = smov 0  }
   0xa LB: > { %s421_s18 = sadd.s32 4294967295, %s687_s17   ;;  %s422_s19 = sadd.s32 4294967294, %s687_s17   ;;  %s687_s17 = sphi %s727_s17, %s21_s17   ;;  %s683_s16 = sphi %s725_s16, %s919_s16   ;;  %s679_s15 = sphi %s723_s15, %s918_s15   ;;  %s675_s14 = sphi %s721_s14, %s917_s14   ;;  %s671_s13 = sphi %s719_s13, %s916_s13   ;;  %s667_s12 = sphi %s717_s12, %s915_s12  }
   0xb   : > { %s84_s20 = sadd.s32 1, %s675_s14  ;;  %p91_p0 = scmp.ne.s32.totalorder %s675_s14, %s671_s13 }
   0xc   : > { %p92_p1 = scmp.eq.s32.totalorder %s687_s17, 0  ;;  %p97_p2 = scmp.ne.s32.totalorder %s671_s13, %s667_s12 }
   0xd   : > { %p755_p3 = scmp.eq.s32.totalorder %s421_s18, 0  ;;  %p123_p4 = scmp.eq.s32.totalorder %s421_s18, 1 }
   0xe   : > { %p93_p5 = por %p92_p1, %p91_p0  ;;  %p129_p6 = scmp.eq.s32.totalorder %s422_s19, 1 }
   0xf   : > { %p761_p7 = por %p755_p3, %p97_p2  ;;  %p765_p8 = por %p123_p4, %p91_p0 }
  0x10   : > { %p769_p9 = por %p129_p6, %p97_p2  ;;  %p423_p10 = scmp.ge.s32.totalorder %s687_s17, 1 }
  0x11   : > { %s906_s23 = scalar_select %p765_p8, 1, 0 }
  0x12   : > { %s907_s24 = scalar_select %p769_p9, 1, 0 }
  0x13   : > { %p136_p11 = scmp.lt.s32.totalorder %s687_s17, 3  ;;  %p487_p1 = scmp.lt.s32.totalorder %s687_s17, 2 }
  0x14   : > { %s158_s28 = sshll.u32 %s899_s1, 4  ;;  %s169_s4 = sand.u32 1, %s675_s14   ;;  %s159_s28 = int_to_ptr.vmem [resolvable:$true] %s158_s28 }
  0x15   : > { %p776_p13 = pnand %p423_p10, %p136_p11  ;;  %p786_p4 = pnand %p487_p1, %p93_p5 }
  0x16   : > { %s33_s5 = sadd.s32 1, %s683_s16  ;;  %s689_s6 = smov [#allocation2]  }
  0x17   : > { %p470_p0 = pneg %p776_p13  ;;  %s911_s0 = sld [smem:[#allocation14_spill]] }
  0x18   : > { %s556_s9 = scalar_lea.vmem %s159_s28, 16  ;;  %p564_p1 = scmp.lt.s32.totalorder %s159_s28, %s159_s28 }
  0x19   : > { %p792_p2 = pnand %p470_p0, %p755_p3  ;;  %p557_p5 = scmp.ne.s32.totalorder %s159_s28, %s556_s9 }
  0x1a   : > { %p565_p0 = scmp.lt.s32.totalorder %s556_s9, %s556_s9 }
  0x1b   : > { %p558_p6 = pneg %p792_p2 }
  0x1c   : > { %p566_p12 = por %p565_p0, %p564_p1 }
  0x1d   : > { %473 = dma.hbm_to_smem (!%p792_p2), %s911_s0, 16, %s689_s6, [#allocation5]  }
  0x1e   : > { %p559_p10 = pnand %p558_p6, %p557_p5 }
  0x20   : > { %p560_p11 = pneg %p559_p10 }
  0x22   : > { %p567_p9 = pnand %p566_p12, %p560_p11 }
  0x24   : > { %570 = shalt.err (!%p567_p9)
}
  0x25   : > { %s690_s10 = smov [#allocation7]   ;;  %p35_p8 = scmp.ge.s32.totalorder %s33_s5, 2 }
  0x26   : > { %476 = dma.vmem_to_smem (!%p792_p2), %s159_s28, 16, %s690_s10, [#allocation6]  }
  0x27   : > { %s427_s11 = sshll.u32 %s169_s4, 3  ;;  %s455_s18 = sshll.u32 %s683_s16, 7 }
  0x28   : > { %s921_s5 = smov (%p35_p8, %s33_s5), 0  ;;  %s180_s27 = scalar_lea.hbm %s900_s2, %s455_s18 }
  0x29   : > { %s79_s6 = ssub.s32 %s683_s16, %s921_s5  ;;  %s173_s7 = scalar_lea.vmem [#allocation8], %s427_s11 }
  0x2a   : > { %s181_s8 = sshll.u32 %s173_s7, 4  ;;  %p82_p9 = scmp.eq.s32.totalorder %s79_s6, 0  ;;  %s182_s8 = int_to_ptr.vmem [resolvable:$true] %s181_s8 }
  0x2b   : > { %s170_s9 = scalar_lea.sflag [#allocation3], %s169_s4  ;;  %p573_p12 = pneg %p786_p4 }
  0x2c   : > { %s818_s30 = scalar_select %p82_p9, %s675_s14, %s84_s20  }
  0x2d   : > { %s584_s28 = scalar_lea.vmem %s182_s8, 128  ;;  %s691_s10 = smov [#allocation8]  }
  0x2e   : > { %p585_p2 = scmp.ne.s32.totalorder %s182_s8, %s584_s28  ;;  %s589_s0 = sshll.u32 %s691_s10, 4  ;;  %s590_s0 = int_to_ptr.vmem [resolvable:$false] %s589_s0 }
  0x2f   : > { %s591_s19 = scalar_lea.vmem %s590_s0, 256  ;;  %p592_p6 = scmp.lt.s32.totalorder %s182_s8, %s590_s0 }
  0x30   : > { %p587_p8 = pnand %p585_p2, %p573_p12  ;;  %p593_p10 = scmp.lt.s32.totalorder %s591_s19, %s584_s28 }
  0x32   : > { %p588_p5 = pneg %p587_p8  ;;  %p594_p11 = por %p593_p10, %p592_p6 }
  0x34   : > { %p595_p1 = pnand %p594_p11, %p588_p5 }
  0x36   : > { %598 = shalt.err (!%p595_p1)
}
  0x37   : > { %s692_s11 = smov 32   ;;  %s693_s20 = smov 2  }
  0x38   : > { %480 = dma.hbm_to_vmem [thread:$0]  (!%p786_p4), %s180_s27, 128, %s182_s8, %s170_s9, %s692_s11, %s692_s11, %s693_s20  }
  0x39   : > { %193 = sbr.rel (%p776_p13) target bundleno = 112 (0x70), region = 32 }
  0x3e   : > { %650 = dma.done.wait (%p755_p3), [#allocation5], 16  }
  0x3f   : > { %652 = vsyncadd (%p755_p3), [#allocation5], 4294967280 }
  0x40   : > { %654 = dma.done.wait (%p755_p3), [#allocation6], 16  }
  0x41   : > { %656 = vsyncadd (%p755_p3), [#allocation6], 4294967280  ;;  %s835_s0 = sand.u32 1, %s671_s13  }
  0x42   : > { %s433_s25 = sshll.u32 %s835_s0, 3  ;;  %s204_s29 = scalar_lea.sflag [#allocation3], %s835_s0 }
  0x43   : > { %s207_s4 = scalar_lea.vmem [#allocation8], %s433_s25 }
  0x44   : > { %658 = dma.done.wait (%p761_p7), %s204_s29, 128  }
  0x45   : > { %660 = vsyncadd (%p761_p7), %s204_s29, 4294967168 }
  0x46   : > { %212 = sfence }
  0x47   : > { %s238_s18 = sld [smem:[#allocation2]]  ;;  %v231_v0 = vld [vmem:[%s207_s4] sm:$0x3]  ;;  %v434_v1 = vld [vmem:[%s207_s4 + $0x2] sm:$0x3]  ;;  %s456_s10 = smul.u32 6, %s835_s0 }
  0x48   : > { %s241_s26 = sld [smem:[#allocation7]]  ;;  %v435_v3 = vld [vmem:[%s207_s4 + $0x4] sm:$0x3]  ;;  %v436_v6 = vld [vmem:[%s207_s4 + $0x6] sm:$0x3]  ;;  %p912_p7 = scmp.ne.s32.totalorder %s906_s23, 0 }
  0x49   : > { %s437_s27 = sld [smem:[#allocation2 + $0x1]]  ;;  %s230_s4 = scalar_lea.vmem [#allocation9], %s456_s10 }
  0x4a   : > { %s438_s21 = sld [smem:[#allocation2 + $0x2]] }
  0x4b   : > { %s439_s6 = sld [smem:[#allocation2 + $0x3]] }
  0x4c   : > { %s440_s7 = sld [smem:[#allocation2 + $0x4]] }
  0x4d   : > { %v239_v2 = vstv %s238_s18  ;;  %s441_s8 = sld [smem:[#allocation7 + $0x1]]  ;;  %s312_s18 = sshll.u32 %s230_s4, 4  ;;  %s845_s18 = int_to_ptr.vmem [resolvable:$true] %s312_s18 }
  0x4e   : > { %v240_v4 = vmul.f32 %v239_v2, %v231_v0  ;;  %v242_v5 = vstv %s241_s26  ;;  %s442_s9 = sld [smem:[#allocation2 + $0x5]]  ;;  %s457_s26 = smul.u32 96, %s679_s15 }
  0x4f   : > { %v245_v7 = vstv %s437_s27  ;;  %s443_s22 = sld [smem:[#allocation2 + $0x6]]  ;;  %s694_s15 = smov [#allocation9]  }
  0x50   : > { %v243_v8 = vadd.f32 %v242_v5, %v240_v4  ;;  %v246_v9 = vmul.f32 %v434_v1, %v245_v7  ;;  %v249_v10 = vstv %s438_s21  ;;  %s444_s28 = sld [smem:[#allocation2 + $0x7]] }
  0x51   : > { %v250_v11 = vmul.f32 %v435_v3, %v249_v10  ;;  %v253_v12 = vstv %s439_s6  ;;  %s446_s19 = sld [smem:[#allocation2 + $0x8]]  ;;  %s850_s6 = scalar_lea.hbm %s901_s3, %s457_s26 }
  0x52   : > { %v247_v13 = vadd.f32 %v246_v9, %v243_v8  ;;  %v254_v14 = vmul.f32 %v436_v6, %v253_v12  ;;  %v258_v15 = vstv %s440_s7  ;;  %s447_s11 = sld [smem:[#allocation7 + $0x2]]  ;;  %s298_s7 = scalar_lea.sflag [#allocation4], %s835_s0 }
  0x53   : > { %v259_v16 = vmul.f32 %v258_v15, %v231_v0  ;;  %v261_v17 = vstv %s441_s8  ;;  %s448_s20 = sld [smem:[#allocation2 + $0x9]]  ;;  %s599_s8 = scalar_lea.vmem %s845_s18, 96 }
  0x54   : > { %v251_v18 = vadd.f32 %v250_v11, %v247_v13  ;;  %v264_v19 = vstv %s442_s9  ;;  %s449_s25 = sld [smem:[#allocation2 + $0xa]]  ;;  %p600_p3 = scmp.ne.s32.totalorder %s845_s18, %s599_s8 }
  0x55   : > { %v262_v20 = vadd.f32 %v261_v17, %v259_v16  ;;  %v265_v21 = vmul.f32 %v434_v1, %v264_v19  ;;  %v268_v22 = vstv %s443_s22  ;;  %s450_s29 = sld [smem:[#allocation2 + $0xb]]  ;;  %s603_s9 = sshll.u32 %s694_s15, 4  ;;  %s604_s9 = int_to_ptr.vmem [resolvable:$false] %s603_s9 }
  0x56   : > { %v255_v23 = vadd.f32 %v254_v14, %v251_v18  ;;  %v269_v24 = vmul.f32 %v435_v3, %v268_v22  ;;  %v272_v25 = vstv %s444_s28  ;;  %p601_p13 = pnand %p600_p3, %p912_p7  ;;  %s605_s22 = scalar_lea.vmem %s604_s9, 192 }
  0x57   : > { %v266_v26 = vadd.f32 %v265_v21, %v262_v20  ;;  %v273_v27 = vmul.f32 %v436_v6, %v272_v25  ;;  %v278_v28 = vstv %s446_s19  ;;  %p606_p0 = scmp.lt.s32.totalorder %s845_s18, %s604_s9  ;;  %p607_p9 = scmp.lt.s32.totalorder %s605_s22, %s599_s8 }
  0x58   : > { %256 = vst [vmem:[%s230_s4] sm:$0x3] %v255_v23  ;;  %v279_v29 = vmul.f32 %v278_v28, %v231_v0  ;;  %v281_v30 = vstv %s447_s11  ;;  %p602_p4 = pneg %p601_p13 }
  0x59   : > { %v270_v31 = vadd.f32 %v269_v24, %v266_v26  ;;  %v284_v32 = vstv %s448_s20  ;;  %p608_p12 = por %p607_p9, %p606_p0 }
  0x5a   : > { %v282_v33 = vadd.f32 %v281_v30, %v279_v29  ;;  %v285_v34 = vmul.f32 %v434_v1, %v284_v32  ;;  %v288_v35 = vstv %s449_s25 }
  0x5b   : > { %v274_v36 = vadd.f32 %v273_v27, %v270_v31  ;;  %v289_v37 = vmul.f32 %v435_v3, %v288_v35  ;;  %v292_v38 = vstv %s450_s29  ;;  %p609_p2 = pnand %p608_p12, %p602_p4 }
  0x5c   : > { %v286_v39 = vadd.f32 %v285_v34, %v282_v33  ;;  %v293_v40 = vmul.f32 %v436_v6, %v292_v38 }
  0x5d   : > { %445 = vst [vmem:[%s230_s4 + $0x2] sm:$0x3] %v274_v36 }
  0x5e   : > { %v290_v41 = vadd.f32 %v289_v37, %v286_v39 }
  0x60   : > { %v294_v42 = vadd.f32 %v293_v40, %v290_v41 }
  0x62   : > { %451 = vst [vmem:[%s230_s4 + $0x4] sm:$0x3] %v294_v42 }
  0x63   : > { %612 = shalt.err (!%p609_p2)
}
  0x64   : > { %s613_s28 = scalar_lea.hbm %s850_s6, 96  ;;  %s617_s11 = scalar_lea.hbm %s901_s3, 192 }
  0x65   : > { %p614_p8 = scmp.ne.s32.totalorder %s850_s6, %s613_s28  ;;  %p618_p10 = scmp.lt.s32.totalorder %s850_s6, %s901_s3 }
  0x66   : > { %p619_p11 = scmp.lt.s32.totalorder %s617_s11, %s613_s28 }
  0x67   : > { %p615_p5 = pnand %p614_p8, %p912_p7 }
  0x68   : > { %p620_p1 = por %p619_p11, %p618_p10 }
  0x69   : > { %p616_p6 = pneg %p615_p5 }
  0x6b   : > { %p621_p3 = pnand %p620_p1, %p616_p6 }
  0x6d   : > { %624 = shalt.err (!%p621_p3)
}
  0x6e   : > { %s695_s29 = smov 32   ;;  %s696_s4 = smov 2  }
  0x6f   : > { %468 = dma.vmem_to_hbm [thread:$0]  (%p912_p7), %s845_s18, 96, %s850_s6, %s298_s7, %s695_s29, %s695_s29, %s696_s4  }
  0x70 PF: > { %s327_s26 = sand.u32 1, %s667_s12   ;;  %p913_p13 = scmp.ne.s32.totalorder %s907_s24, 0 }
  0x71   : > { %p914_p4 = scmp.ge.s32.totalorder %s687_s17, 2  ;;  %s328_s27 = scalar_lea.sflag [#allocation4], %s327_s26 }
  0x73   : > { %p482_p0 = pnand %p914_p4, %p913_p13 }
  0x75   : > { %p483_p9 = pneg %p482_p0 }
  0x77   : > { %662 = dma.done.wait (%p483_p9), %s328_s27, 96  }
  0x78   : > { %664 = vsyncadd (%p483_p9), %s328_s27, 4294967200  ;;  %s21_s17 = sadd.s32 1, %s687_s17   ;;  %s915_s12 = smov %s671_s13 }
  0x79   : > { %p18_p12 = scmp.ge.s32.totalorder %s21_s17, 4   ;;  %s916_s13 = smov %s675_s14 }
  0x7a   : > { %s917_s14 = smov %s818_s30  ;;  %s918_s15 = smov %s683_s16 }
  0x7b   : > { %s919_s16 = smov %s921_s5  ;;  %20 = sbr.rel (!%p18_p12) target bundleno = 10 (0xa), region = 92 }
  0x80   :  { %333 = vsyncpa [#allocation3], 1 }
  0x81   :  { %335 = vsyncpa [#allocation3 + $0x1], 1 }
  0x82   :  { %336 = vsyncpa [#allocation4], 1 }
  0x83   :  { %338 = vsyncpa [#allocation4 + $0x1], 1 }
  0x84   :  { %339 = vsyncpa [#allocation5], 1 }
  0x85   :  { %341 = vsyncpa [#allocation5 + $0x1], 1 }
  0x86   :  { %342 = vsyncpa [#allocation6], 1 }
  0x87   :  { %344 = vsyncpa [#allocation6 + $0x1], 1 }

</bundles_post_ra>
